<compile_context>
chip_gen: v6e
topology: v6e:2x2x1
jax: 0.10.0
libtpu: 0.0.40
codegen_flags: <defaults>
</compile_context>

<pallas_src>
from functools import partial

import jax
import jax.numpy as jnp
import numpy as np
from jax import lax
from jax.experimental import pallas as pl
from jax.experimental.pallas import tpu as pltpu


# ----------------------------- in-kernel math -------------------------------

def _erf(z):
    """Abramowitz & Stegun 7.1.26 rational erf approximation (|err| <= 1.5e-7).

    Only ops with guaranteed Mosaic lowerings; the divide is an approximate
    reciprocal on the EUP so the (otherwise VALU-heavy) epilogue stays cheap.
    """
    a1, a2, a3, a4, a5 = (0.254829592, -0.284496736, 1.421413741,
                          -1.453152027, 1.061405429)
    p = 0.3275911
    za = jnp.abs(z)
    t = pl.reciprocal(1.0 + p * za, approx=True)            # EUP slot
    poly = ((((a5 * t + a4) * t + a3) * t + a2) * t + a1) * t
    e = 1.0 - poly * jnp.exp(-za * za)                       # exp -> EUP slot
    return jnp.where(z < 0.0, -e, e)


def _gelu_exact(x):
    return 0.5 * x * (1.0 + _erf(x * 0.7071067811865476))


# ------------------------------ Pallas kernel --------------------------------

def _project_readout_kernel(tok_ref, shift_ref, wt_ref, o_ref, *, compute_dtype):
    # tok_ref:   (1, tm, C)  patch-token tile of one batch element (input dtype)
    # shift_ref: (1, 1, C)   fp32 per-batch  cls @ W_r^T + bias
    # wt_ref:    (C, C)      W_t^T in the compute dtype (resident, single buffer)
    tok = tok_ref[0].astype(compute_dtype)
    y = jnp.dot(tok, wt_ref[...], preferred_element_type=jnp.float32)
    y = y + shift_ref[0]                      # fp32 broadcast over the tm rows
    o_ref[0] = _gelu_exact(y).astype(o_ref.dtype)


# -------------------------------- wrapper ------------------------------------

def _round_up(a, m):
    return (a + m - 1) // m * m


def project_readout_forward(x, weight, bias, *, start_index=1, tm_max=512,
                            compute_dtype=jnp.bfloat16):
    """x: (B, T, C); weight: (C, 2C); bias: (C,)  (PyTorch nn.Linear layout)."""
    B, T, C = x.shape
    assert weight.shape == (C, 2 * C) and bias.shape == (C,)
    M = T - start_index
    out_dtype = x.dtype

    # Weight split: out = tok @ W_t^T + cls @ W_r^T + b.
    w32 = weight.astype(jnp.float32)
    wt = jnp.transpose(w32[:, :C]).astype(compute_dtype)      # (C, C) on the MXU
    wr = jnp.transpose(w32[:, C:])                            # (C, C) fp32 (glue)

    # Tiny per-batch fp32 glue (B*C*C MACs): readout projection + bias folded
    # into a single shift vector that the kernel adds before GELU.
    cls = x[:, 0, :].astype(jnp.float32)                      # (B, C)
    shift = (jnp.dot(cls, wr, precision=lax.Precision.HIGHEST)
             + bias.astype(jnp.float32)).reshape(B, 1, C)

    # Single remaining wrapper materialization: drop the readout token and cast
    # to the compute dtype in one fused op (no pad, no output un-slice).
    # TODO(synk): express the +start_index row offset with element-offset
    # BlockSpecs / an in-kernel DMA to remove this last HBM round trip too.
    tok = x[:, start_index:, :].astype(compute_dtype)          # (B, M, C)

    # Row-tile size: largest tile <= tm_max that (nearly) divides M (small
    # ragged tail, no padding), multiple of 8 sublanes; force >= 2 tiles when
    # B == 1 so both TensorCores get work on single-image inference.
    n_tiles = pl.cdiv(M, tm_max)
    if B == 1 and n_tiles == 1 and M >= 16:
        n_tiles = 2
    tm = min(_round_up(pl.cdiv(M, n_tiles), 8), _round_up(M, 8))
    n_tiles = pl.cdiv(M, tm)

    itemsize = jnp.dtype(out_dtype).itemsize
    cost = pl.CostEstimate(
        flops=2 * B * M * C * C,
        transcendentals=B * M * C,
        bytes_accessed=(tok.size * tok.dtype.itemsize        # token read
                        + B * M * C * itemsize               # output write
                        + wt.size * wt.dtype.itemsize        # weight read
                        + shift.size * 4))                   # shift read

    out = pl.pallas_call(
        partial(_project_readout_kernel, compute_dtype=compute_dtype),
        out_shape=jax.ShapeDtypeStruct((B, M, C), out_dtype),
        grid=(n_tiles, B),          # tile axis first -> megacore split at B == 1
        in_specs=[
            pl.BlockSpec((1, tm, C), lambda mi, bi: (bi, mi, 0)),
            pl.BlockSpec((1, 1, C), lambda mi, bi: (bi, 0, 0)),
            pl.BlockSpec((C, C), lambda mi, bi: (0, 0),
                         pipeline_mode=pl.Buffered(1)),       # constant index
        ],
        out_specs=pl.BlockSpec((1, tm, C), lambda mi, bi: (bi, mi, 0)),
        compiler_params=pltpu.CompilerParams(
            dimension_semantics=("parallel", "parallel"),
            vmem_limit_bytes=64 * 1024 * 1024),
        cost_estimate=cost,
    )(tok, shift, wt)

    return out


# ---------------------------------- main --------------------------------------

if __name__ == "__main__":
    key = jax.random.PRNGKey(0)
    kx, kw, kb = jax.random.split(key, 3)

    # x: (batch, tokens, in_features) = 1 readout token + 128 patch tokens.
    # bf16 activations (the realistic TPU inference dtype); fp32 parameters.
    B, T, C = 2, 129, 128
    start_index = 1

    x = jax.random.normal(kx, (B, T, C), jnp.float32).astype(jnp.bfloat16)
    # nn.Linear(2C, C) default init: U(-1/sqrt(2C), 1/sqrt(2C)).
    bound = 1.0 / np.sqrt(2 * C)
    w = jax.random.uniform(kw, (C, 2 * C), jnp.float32, -bound, bound)
    b = jax.random.uniform(kb, (C,), jnp.float32, -bound, bound)

    fwd = jax.jit(partial(project_readout_forward, start_index=start_index))
    out = jax.block_until_ready(fwd(x, w, b))

    # Pure-JAX reference: literal concat -> Linear -> exact (erf) GELU, in fp32,
    # from the same bf16 activations.  Tolerance covers bf16 weight/output
    # quantization and the approximate-reciprocal erf (see kernel comments).
    xf = x.astype(jnp.float32)
    readout = jnp.broadcast_to(xf[:, :1, :], (B, T - 1, C))
    features = jnp.concatenate([xf[:, start_index:, :], readout], axis=-1)
    pre = jnp.dot(features, w.T, precision=lax.Precision.HIGHEST) + b
    ref = jax.nn.gelu(pre, approximate=False)

    np.testing.assert_allclose(np.asarray(out, dtype=np.float32),
                               np.asarray(ref), rtol=3e-2, atol=3e-2)
    print("KERNEL_OK")
</pallas_src>

<mosaic_0001>
module attributes {stable_mosaic.version = 11 : i64} {
  func.func @_project_readout_kernel(%arg0: i32, %arg1: i32, %arg2: memref<1x128x128xbf16, #tpu.memory_space<vmem>>, %arg3: memref<1x1x128xf32, #tpu.memory_space<vmem>>, %arg4: memref<128x128xbf16, #tpu.memory_space<vmem>>, %arg5: memref<1x128x128xbf16, #tpu.memory_space<vmem>>) attributes {dimension_semantics = [#tpu.dimension_semantics<parallel>, #tpu.dimension_semantics<parallel>], iteration_bounds = array<i64: 1, 2>, scalar_prefetch = 0 : i64, scratch_operands = 0 : i64, tpu.core_type = #tpu.core_type<tc>, window_params = [{transform_indices = @transform_0, window_bounds = array<i64: 1, 128, 128>}, {transform_indices = @transform_1, window_bounds = array<i64: 1, 1, 128>}, {pipeline_mode = #tpu.pipeline_mode<synchronous>, transform_indices = @transform_2, window_bounds = array<i64: 128, 128>}, {transform_indices = @transform_3, window_bounds = array<i64: 1, 128, 128>}]} {
    %c0 = arith.constant 0 : index
    %c0_0 = arith.constant 0 : index
    %c0_1 = arith.constant 0 : index
    %0 = vector.load %arg2[%c0, %c0_0, %c0_1] : memref<1x128x128xbf16, #tpu.memory_space<vmem>>, vector<1x128x128xbf16>
    %1 = vector.shape_cast %0 : vector<1x128x128xbf16> to vector<128x128xbf16>
    %c0_2 = arith.constant 0 : index
    %c0_3 = arith.constant 0 : index
    %2 = vector.load %arg4[%c0_2, %c0_3] : memref<128x128xbf16, #tpu.memory_space<vmem>>, vector<128x128xbf16>
    %cst = arith.constant dense<0.000000e+00> : vector<128x128xf32>
    %3 = tpu.matmul %1, %2, %cst {dimension_numbers = #tpu.dot_dimension_numbers<[1], [0], [0], [1], [0, 0, 1, 1], [], []>} : vector<128x128xbf16>, vector<128x128xbf16>, vector<128x128xf32> -> vector<128x128xf32>
    %c0_4 = arith.constant 0 : index
    %c0_5 = arith.constant 0 : index
    %c0_6 = arith.constant 0 : index
    %4 = vector.load %arg3[%c0_4, %c0_5, %c0_6] : memref<1x1x128xf32, #tpu.memory_space<vmem>>, vector<1x1x128xf32>
    %5 = vector.shape_cast %4 : vector<1x1x128xf32> to vector<1x128xf32>
    %6 = vector.broadcast %5 : vector<1x128xf32> to vector<128x128xf32>
    %7 = arith.addf %3, %6 : vector<128x128xf32>
    %cst_7 = arith.constant 5.000000e-01 : f32
    %8 = vector.broadcast %cst_7 : f32 to vector<128x128xf32>
    %9 = arith.mulf %8, %7 : vector<128x128xf32>
    %cst_8 = arith.constant 0.707106769 : f32
    %10 = vector.broadcast %cst_8 : f32 to vector<128x128xf32>
    %11 = arith.mulf %7, %10 : vector<128x128xf32>
    %12 = math.absf %11 : vector<128x128xf32>
    %cst_9 = arith.constant 0.327591091 : f32
    %13 = vector.broadcast %cst_9 : f32 to vector<128x128xf32>
    %14 = arith.mulf %13, %12 : vector<128x128xf32>
    %cst_10 = arith.constant 1.000000e+00 : f32
    %15 = vector.broadcast %cst_10 : f32 to vector<128x128xf32>
    %16 = arith.addf %15, %14 : vector<128x128xf32>
    %17 = tpu.reciprocal %16 {approx = true} : vector<128x128xf32> -> vector<128x128xf32>
    %cst_11 = arith.constant 1.06140542 : f32
    %18 = vector.broadcast %cst_11 : f32 to vector<128x128xf32>
    %19 = arith.mulf %18, %17 : vector<128x128xf32>
    %cst_12 = arith.constant -1.45315206 : f32
    %20 = vector.broadcast %cst_12 : f32 to vector<128x128xf32>
    %21 = arith.addf %19, %20 : vector<128x128xf32>
    %22 = arith.mulf %21, %17 : vector<128x128xf32>
    %cst_13 = arith.constant 1.42141378 : f32
    %23 = vector.broadcast %cst_13 : f32 to vector<128x128xf32>
    %24 = arith.addf %22, %23 : vector<128x128xf32>
    %25 = arith.mulf %24, %17 : vector<128x128xf32>
    %cst_14 = arith.constant -0.284496725 : f32
    %26 = vector.broadcast %cst_14 : f32 to vector<128x128xf32>
    %27 = arith.addf %25, %26 : vector<128x128xf32>
    %28 = arith.mulf %27, %17 : vector<128x128xf32>
    %cst_15 = arith.constant 0.254829586 : f32
    %29 = vector.broadcast %cst_15 : f32 to vector<128x128xf32>
    %30 = arith.addf %28, %29 : vector<128x128xf32>
    %31 = arith.mulf %30, %17 : vector<128x128xf32>
    %cst_16 = arith.constant 0.000000e+00 : f32
    %32 = vector.broadcast %cst_16 : f32 to vector<128x128xf32>
    %33 = arith.subf %32, %12 : vector<128x128xf32>
    %34 = arith.mulf %33, %12 : vector<128x128xf32>
    %35 = math.exp %34 : vector<128x128xf32>
    %36 = arith.mulf %31, %35 : vector<128x128xf32>
    %cst_17 = arith.constant 1.000000e+00 : f32
    %37 = vector.broadcast %cst_17 : f32 to vector<128x128xf32>
    %38 = arith.subf %37, %36 : vector<128x128xf32>
    %cst_18 = arith.constant 0.000000e+00 : f32
    %39 = vector.broadcast %cst_18 : f32 to vector<128x128xf32>
    %40 = arith.cmpf olt, %11, %39 : vector<128x128xf32>
    %cst_19 = arith.constant 0.000000e+00 : f32
    %41 = vector.broadcast %cst_19 : f32 to vector<128x128xf32>
    %42 = arith.subf %41, %38 : vector<128x128xf32>
    %43 = arith.select %40, %42, %38 : vector<128x128xi1>, vector<128x128xf32>
    %cst_20 = arith.constant 1.000000e+00 : f32
    %44 = vector.broadcast %cst_20 : f32 to vector<128x128xf32>
    %45 = arith.addf %44, %43 : vector<128x128xf32>
    %46 = arith.mulf %9, %45 : vector<128x128xf32>
    %47 = arith.truncf %46 : vector<128x128xf32> to vector<128x128xbf16>
    %c0_21 = arith.constant 0 : index
    %c0_22 = arith.constant 0 : index
    %c0_23 = arith.constant 0 : index
    %48 = vector.load %arg5[%c0_21, %c0_22, %c0_23] : memref<1x128x128xbf16, #tpu.memory_space<vmem>>, vector<1x128x128xbf16>
    %49 = vector.shape_cast %48 : vector<1x128x128xbf16> to vector<128x128xbf16>
    %50 = vector.shape_cast %47 : vector<128x128xbf16> to vector<1x128x128xbf16>
    tpu.vector_store %arg5[%c0_21, %c0_22, %c0_23], %50 {strides = array<i32>} : memref<1x128x128xbf16, #tpu.memory_space<vmem>>, vector<1x128x128xbf16>,
    return
  }
  func.func @transform_0(%arg0: i32, %arg1: i32) -> (i32, i32, i32) {
    %c0_i32 = arith.constant 0 : i32
    %c0_i32_0 = arith.constant 0 : i32
    return %arg1, %arg0, %c0_i32 : i32, i32, i32
  }
  func.func @transform_1(%arg0: i32, %arg1: i32) -> (i32, i32, i32) {
    %c0_i32 = arith.constant 0 : i32
    %c0_i32_0 = arith.constant 0 : i32
    %c0_i32_1 = arith.constant 0 : i32
    return %arg1, %c0_i32, %c0_i32_0 : i32, i32, i32
  }
  func.func @transform_2(%arg0: i32, %arg1: i32) -> (i32, i32) {
    %c0_i32 = arith.constant 0 : i32
    %c0_i32_0 = arith.constant 0 : i32
    %c0_i32_1 = arith.constant 0 : i32
    return %c0_i32, %c0_i32_0 : i32, i32
  }
  func.func @transform_3(%arg0: i32, %arg1: i32) -> (i32, i32, i32) {
    %c0_i32 = arith.constant 0 : i32
    %c0_i32_0 = arith.constant 0 : i32
    return %arg1, %arg0, %c0_i32 : i32, i32, i32
  }
}

</mosaic_0001>

<bundles_post_ra>
// kernel: project_readout_forward.1
= control target key start
LH: loop header
LB: loop body
LE: loop exit
PB: predicated region body
PF: predicated region fallthrough
CT: control target
= control target key end

     0   :  { %8 = vsyncpa [#allocation3], 0  ;;  %s1927_s0 = inlined_call_operand.vmem [shape: bf16[2,128,128], index: 0, kind: input, shape index: {}]   ;;  %s1928_s1 = inlined_call_operand.vmem [shape: f32[2,1,128], index: 1, kind: input, shape index: {}]   ;;  %s1929_s2 = inlined_call_operand.vmem [shape: bf16[128,128], index: 2, kind: input, shape index: {}]   ;;  %s1930_s3 = inlined_call_operand.hbm [shape: bf16[2,128,128], index: 3, kind: output, shape index: {}]  }
   0x1   :  { %10 = vsyncpa [#allocation3 + $0x1], 0  ;;  %s1460_s12 = smov 0   ;;  %s1462_s13 = smov 0  }
   0x2   :  { %s1464_s14 = smov 0   ;;  %s1466_s15 = smov 0  }
   0x3   :  { %s1468_s16 = smov 0   ;;  %s1470_s17 = smov 0  }
   0x4 LB: > { %s1047_s18 = sadd.s32 4294967295, %s1435_s17   ;;  %s1048_s19 = sadd.s32 4294967294, %s1435_s17   ;;  %s1435_s17 = sphi %s1470_s17, %s16_s17   ;;  %s1431_s16 = sphi %s1468_s16, %s1937_s16   ;;  %s1427_s15 = sphi %s1466_s15, %s1936_s15   ;;  %s1423_s14 = sphi %s1464_s14, %s1935_s14   ;;  %s1419_s13 = sphi %s1462_s13, %s1934_s13   ;;  %s1415_s12 = sphi %s1460_s12, %s1933_s12  }
   0x5   : > { %s25_s20 = sadd.s32 1, %s1431_s16  ;;  %s112_s21 = sadd.s32 1, %s1423_s14 }
   0x6   : > { %p26_p0 = scmp.ge.s32.totalorder %s25_s20, 2  ;;  %p122_p1 = scmp.ne.s32.totalorder %s1423_s14, %s1419_s13 }
   0x7   : > { %p123_p2 = scmp.eq.s32.totalorder %s1047_s18, 1  ;;  %p128_p3 = scmp.ne.s32.totalorder %s1419_s13, %s1415_s12 }
   0x8   : > { %s1939_s20 = smov (%p26_p0, %s25_s20), 0  ;;  %p129_p5 = scmp.eq.s32.totalorder %s1048_s19, 1 }
   0x9   : > { %p1500_p4 = por %p123_p2, %p122_p1  ;;  %s107_s23 = ssub.s32 %s1431_s16, %s1939_s20 }
   0xa   : > { %p1051_p6 = scmp.ge.s32.totalorder %s1435_s17, 1  ;;  %p110_p7 = scmp.eq.s32.totalorder %s107_s23, 0 }
   0xb   : > { %p1507_p8 = por %p129_p5, %p128_p3  ;;  %p169_p9 = scmp.lt.s32.totalorder %s1435_s17, 3 }
   0xc   : > { %s1513_s25 = scalar_select %p110_p7, %s1423_s14, %s112_s21  }
   0xd   : > { %p170_p10 = pnand %p1051_p6, %p169_p9 }
   0xe   : > { %p201_p11 = scmp.lt.s32.totalorder (!%p170_p10), %s1427_s15, 1 }
   0xf   : > { %173 = sbr.rel (%p170_p10) target bundleno = 386 (0x182), region = 32 }
  0x14   : > { %v1279_v0 = vld [vmem:[%s1929_s2 + $0x38] sm:$0xff]   ;;  %v1280_v1 = vld [vmem:[%s1929_s2 + $0x30] sm:$0xff]   ;;  %s1523_s30 = scalar_select %p201_p11, %s1427_s15, 1  ;;  %v1281_v2 = vld [vmem:[%s1929_s2 + $0x28] sm:$0xff]  }
  0x15   : > { %1174 = vmatprep.subr.bf16.mxu0 %v1279_v0  ;;  %1206 = vmatprep.subr.bf16.mxu1 %v1279_v0  ;;  %v1282_v3 = vld [vmem:[%s1929_s2 + $0x20] sm:$0xff]   ;;  %v1283_v6 = vld [vmem:[%s1929_s2 + $0x18] sm:$0xff]   ;;  %v1284_v7 = vld [vmem:[%s1929_s2 + $0x10] sm:$0xff]  }
  0x16   : > { %1175 = vmatpush3.bf16.msra.mxu0 %v1279_v0  ;;  %1214 = vmatpush3.bf16.msra.mxu1 %v1279_v0  ;;  %s1093_s6 = sshll.u32 %s1523_s30, 6  ;;  %v1285_v8 = vld [vmem:[%s1929_s2 + $0x8] sm:$0xff]   ;;  %v1286_v9 = vld [vmem:[%s1929_s2] sm:$0xff]  }
  0x17   : > { %1176 = vmatprep.subr.bf16.mxu0 %v1280_v1  ;;  %1207 = vmatprep.subr.bf16.mxu1 %v1280_v1  ;;  %s1532_s9 = scalar_lea.vmem %s1927_s0, %s1093_s6  ;;  %s212_s6 = scalar_lea.vmem %s1928_s1, %s1523_s30 }
  0x18   : > { %v1287_v4 = vld [vmem:[%s1532_s9] sm:$0xff]   ;;  %v1289_v10 = vld [vmem:[%s1532_s9 + $0x8] sm:$0xff]   ;;  %v1291_v12 = vld [vmem:[%s1532_s9 + $0x10] sm:$0xff]   ;;  %s197_s30 = sand.u32 1, %s1419_s13  }
  0x19   : > { %v1288_v5 = vld [vmem:[%s1532_s9 + $0x20] sm:$0xff]   ;;  %1190 = vmatprep.mubr.bf16.mxu0 %v1287_v4  ;;  %v1290_v11 = vld [vmem:[%s1532_s9 + $0x28] sm:$0xff]   ;;  %v1292_v13 = vld [vmem:[%s1532_s9 + $0x30] sm:$0xff]   ;;  %s1052_s7 = sshll.u32 %s197_s30, 6  ;;  %s1882_s21 = scalar_lea.sflag [#allocation3], %s197_s30 }
  0x1a   : > { %1177 = vmatpush3.bf16.msra.mxu0 %v1280_v1  ;;  %1215 = vmatpush3.bf16.msra.mxu1 %v1280_v1  ;;  %v1293_v14 = vld [vmem:[%s1532_s9 + $0x18] sm:$0xff]   ;;  %v1561_v16 = vld [vmem:[%s212_s6] ss:$0 sm:$0xff]  ;;  %s1743_s8 = scalar_lea.vmem [#allocation2], %s1052_s7 }
  0x1b   : > { %1178 = vmatprep.subr.bf16.mxu0 %v1281_v2  ;;  %1208 = vmatprep.subr.bf16.mxu1 %v1281_v2  ;;  %v1294_v15 = vld [vmem:[%s1532_s9 + $0x38] sm:$0xff]   ;;  %s1110_s9 = sshll.u32 %s1427_s15, 10  ;;  %s959_s10 = sshll.u32 %s1743_s8, 4  ;;  %s1877_s10 = int_to_ptr.vmem [resolvable:$true] %s959_s10 }
  0x1c   : > { %1198 = vmatprep.mubr.bf16.mxu1 %v1288_v5  ;;  %s1875_s19 = scalar_lea.hbm %s1930_s3, %s1110_s9  ;;  %s1359_s23 = scalar_lea.vmem %s1877_s10, 1024 }
  0x1d   : > { %p1360_p12 = scmp.ne.s32.totalorder %s1877_s10, %s1359_s23  ;;  %s1437_s15 = smov [#allocation2]  }
  0x1e   : > { %1179 = vmatpush3.bf16.msra.mxu0 %v1281_v2  ;;  %1216 = vmatpush3.bf16.msra.mxu1 %v1281_v2  ;;  %s1363_s26 = sshll.u32 %s1437_s15, 4  ;;  %s1364_s26 = int_to_ptr.vmem [resolvable:$false] %s1363_s26 }
  0x1f   : > { %1180 = vmatprep.subr.bf16.mxu0 %v1282_v3  ;;  %1209 = vmatprep.subr.bf16.mxu1 %v1282_v3  ;;  %p1361_p13 = pnand %p1360_p12, %p1500_p4  ;;  %s1365_s27 = scalar_lea.vmem %s1364_s26, 2048 }
  0x20   : > { %p1366_p1 = scmp.lt.s32.totalorder %s1877_s10, %s1364_s26  ;;  %p1367_p2 = scmp.lt.s32.totalorder %s1365_s27, %s1359_s23 }
  0x21   : > { %p1362_p0 = pneg %p1361_p13 }
  0x22   : > { %1181 = vmatpush3.bf16.msra.mxu0 %v1282_v3  ;;  %1217 = vmatpush3.bf16.msra.mxu1 %v1282_v3  ;;  %p1368_p3 = por %p1367_p2, %p1366_p1 }
  0x23   : > { %1182 = vmatprep.subr.bf16.mxu0 %v1283_v6  ;;  %1210 = vmatprep.subr.bf16.mxu1 %v1283_v6 }
  0x24   : > { %p1369_p5 = pnand %p1368_p3, %p1362_p0 }
  0x26   : > { %1183 = vmatpush3.bf16.msra.mxu0 %v1283_v6  ;;  %1218 = vmatpush3.bf16.msra.mxu1 %v1283_v6 }
  0x27   : > { %1184 = vmatprep.subr.bf16.mxu0 %v1284_v7  ;;  %1211 = vmatprep.subr.bf16.mxu1 %v1284_v7 }
  0x2a   : > { %1185 = vmatpush3.bf16.msra.mxu0 %v1284_v7  ;;  %1219 = vmatpush3.bf16.msra.mxu1 %v1284_v7 }
  0x2b   : > { %1186 = vmatprep.subr.bf16.mxu0 %v1285_v8  ;;  %1212 = vmatprep.subr.bf16.mxu1 %v1285_v8 }
  0x2e   : > { %1187 = vmatpush3.bf16.msra.mxu0 %v1285_v8  ;;  %1220 = vmatpush3.bf16.msra.mxu1 %v1285_v8 }
  0x2f   : > { %1188 = vmatprep.subr.bf16.mxu0 %v1286_v9  ;;  %1213 = vmatprep.subr.bf16.mxu1 %v1286_v9 }
  0x32   : > { %1189 = vmatpush3.bf16.msra.mxu0 %v1286_v9  ;;  %1221 = vmatpush3.bf16.msra.mxu1 %v1286_v9 }
  0x35   : > { %1191 = vmatmul.mubr.bf16.vlgmr.msra.gmra.mxu0 %v1289_v10  ;;  %1199 = vmatmul.mubr.bf16.vlgmr.msra.gmra.mxu1 %v1290_v11 }
  0x36   : > { %1194 = vmatprep.mubr.bf16.mxu0 %v1291_v12  ;;  %1202 = vmatprep.mubr.bf16.mxu1 %v1292_v13 }
  0x3d   : > { %1195 = vmatmul.mubr.bf16.gmra.mxu0 %v1293_v14  ;;  %1203 = vmatmul.mubr.bf16.gmra.mxu1 %v1294_v15 }
  0xf5   : > { %v1192_v17 = vpop.f32.mrf.mxu0  ;;  %v1200_v18 = vpop.f32.mrf.mxu1 }
  0xf6   : > { %v393_v19 = vadd.f32 %v1192_v17, %v1561_v16  ;;  %v1565_v20 = vadd.f32 %v1200_v18, %v1561_v16 }
  0xf7   : > { %v384_v21 = vpop.f32.mrf.mxu0  ;;  %v416_v22 = vpop.f32.mrf.mxu1 }
  0xf8   : > { %v1567_v23 = vmul.f32 0.70710677, %v393_v19  ;;  %v1570_v24 = vmul.f32 0.70710677, %v1565_v20  ;;  %v1573_v25 = vadd.f32 %v1561_v16, %v384_v21  ;;  %v1576_v26 = vadd.f32 %v1561_v16, %v416_v22 }
  0xf9   : > { %v1193_v33 = vpop.f32.mrf.mxu0  ;;  %v1201_v42 = vpop.f32.mrf.mxu1  ;;  %v1618_v10 = vmul.f32 0.5, %v393_v19 }
  0xfa   : > { %v481_v27 = vand.u32 2147483647, %v1567_v23  ;;  %v489_v28 = vand.u32 2147483647, %v1570_v24  ;;  %v1581_v29 = vmul.f32 0.70710677, %v1573_v25  ;;  %v1589_v41 = vadd.f32 %v1193_v33, %v1561_v16 }
  0xfb   : > { %v1584_v30 = vmul.f32 0.70710677, %v1576_v26  ;;  %v387_v43 = vpop.f32.mrf.mxu0  ;;  %v1595_v47 = vadd.f32 %v1201_v42, %v1561_v16  ;;  %v419_v51 = vpop.f32.mrf.mxu1  ;;  %vm785_vm0 = vcmp.lt.f32.partialorder %v1567_v23, 0.0  ;;  %vm793_vm1 = vcmp.lt.f32.partialorder %v1570_v24, 0.0 }
  0xfc   : > { %v497_v31 = vmul.f32 0.3275911, %v481_v27  ;;  %v505_v32 = vmul.f32 0.3275911, %v489_v28  ;;  %v479_v34 = vand.u32 2147483647, %v1581_v29  ;;  %v1598_v48 = vadd.f32 %v1561_v16, %v387_v43 }
  0xfd   : > { %v487_v35 = vand.u32 2147483647, %v1584_v30  ;;  %v689_v40 = vsub.f32 0.0, %v481_v27  ;;  %v1592_v46 = vmul.f32 0.70710677, %v1589_v41  ;;  %v697_v53 = vsub.f32 0.0, %v489_v28  ;;  %v1196_v8 = vpop.f32.mrf.mxu0  ;;  %v1204_v13 = vpop.f32.mrf.mxu1 }
  0xfe   : > { %v513_v36 = vadd.f32 1.0, %v497_v31  ;;  %v521_v37 = vadd.f32 1.0, %v505_v32  ;;  %v495_v38 = vmul.f32 0.3275911, %v479_v34  ;;  %v1602_v52 = vmul.f32 0.70710677, %v1595_v47 }
  0xff   : > { %v503_v39 = vmul.f32 0.3275911, %v487_v35  ;;  %v705_v49 = vmul.f32 %v689_v40, %v481_v27  ;;  %v482_v50 = vand.u32 2147483647, %v1592_v46  ;;  %v1605_v55 = vmul.f32 0.70710677, %v1598_v48 }
 0x100   : > { %1295 = vrcp.f32 %v513_v36  ;;  %v511_v44 = vadd.f32 1.0, %v495_v38  ;;  %v490_v56 = vand.u32 2147483647, %v1602_v52  ;;  %v1609_v57 = vadd.f32 %v1561_v16, %v419_v51 }
 0x101   : > { %1297 = vrcp.f32 %v521_v37  ;;  %v519_v45 = vadd.f32 1.0, %v503_v39  ;;  %v498_v54 = vmul.f32 0.3275911, %v482_v50  ;;  %v723_v58 = vmul.f32 1.442695, %v705_v49 }
 0x102   : > { %1299 = vrcp.f32 %v511_v44  ;;  %v687_v59 = vsub.f32 0.0, %v479_v34  ;;  %v480_v61 = vand.u32 2147483647, %v1605_v55  ;;  %v506_v62 = vmul.f32 0.3275911, %v490_v56 }
 0x103   : > { %1301 = vrcp.f32 %v519_v45  ;;  %v514_v60 = vadd.f32 1.0, %v498_v54  ;;  %v1613_v63 = vmul.f32 0.70710677, %v1609_v57  ;;  %v713_v0 = vmul.f32 %v697_v53, %v489_v28 }
 0x104   : > { %v695_v1 = vsub.f32 0.0, %v487_v35  ;;  %v496_v2 = vmul.f32 0.3275911, %v480_v61  ;;  %v690_v3 = vsub.f32 0.0, %v482_v50  ;;  %v522_v4 = vadd.f32 1.0, %v506_v62 }
 0x105   : > { %1303 = vrcp.f32 %v514_v60  ;;  %v488_v5 = vand.u32 2147483647, %v1613_v63  ;;  %v703_v6 = vmul.f32 %v687_v59, %v479_v34  ;;  %v698_v11 = vsub.f32 0.0, %v490_v56 }
 0x106   : > { %1305 = vpow2.f32 %v723_v58  ;;  %v512_v7 = vadd.f32 1.0, %v496_v2  ;;  %v739_v17 = vmul.f32 1.442695, %v713_v0  ;;  %v711_v18 = vmul.f32 %v695_v1, %v487_v35 }
 0x107   : > { %1307 = vrcp.f32 %v522_v4  ;;  %v504_v12 = vmul.f32 0.3275911, %v488_v5  ;;  %v706_v22 = vmul.f32 %v690_v3, %v482_v50  ;;  %v1625_v28 = vadd.f32 %v1196_v8, %v1561_v16 }
 0x108   : > { %1309 = vrcp.f32 %v512_v7  ;;  %v719_v31 = vmul.f32 1.442695, %v703_v6  ;;  %v688_v32 = vsub.f32 0.0, %v480_v61  ;;  %v1628_v33 = vadd.f32 %v1204_v13, %v1561_v16 }
 0x109   : > { %v520_v27 = vadd.f32 1.0, %v504_v12  ;;  %v714_v37 = vmul.f32 %v698_v11, %v490_v56  ;;  %v696_v35 = vsub.f32 0.0, %v488_v5  ;;  %v735_v40 = vmul.f32 1.442695, %v711_v18 }
 0x10a   : > { %v725_v44 = vmul.f32 1.442695, %v706_v22  ;;  %v1638_v45 = vmul.f32 0.70710677, %v1625_v28  ;;  %v1641_v49 = vmul.f32 0.70710677, %v1628_v33  ;;  %v704_v58 = vmul.f32 %v688_v32, %v480_v61 }
 0x10b   : > { %1311 = vrcp.f32 %v520_v27  ;;  %v741_v56 = vmul.f32 1.442695, %v714_v37  ;;  %v712_v59 = vmul.f32 %v696_v35, %v488_v5  ;;  %vm783_vm2 = vcmp.lt.f32.partialorder %v1581_v29, 0.0 }
 0x10c   : > { %1313 = vpow2.f32 %v739_v17  ;;  %v1650_v3 = vand.u32 2147483647, %v1638_v45  ;;  %v1653_v4 = vand.u32 2147483647, %v1641_v49  ;;  %v721_v12 = vmul.f32 1.442695, %v704_v58 }
 0x10d   : > { %v1616_v9 = vpop.eup %1295  ;;  %1315 = vpow2.f32 %v719_v31  ;;  %v737_v13 = vmul.f32 1.442695, %v712_v59  ;;  %vm786_vm3 = vcmp.lt.f32.partialorder %v1592_v46, 0.0  ;;  %vm791_vm4 = vcmp.lt.f32.partialorder %v1584_v30, 0.0 }
 0x10e   : > { %v1620_v14 = vpop.eup %1297  ;;  %v545_v15 = vmul.f32 1.0614054, %v1616_v9  ;;  %1317 = vpow2.f32 %v735_v40  ;;  %v501_v32 = vmul.f32 0.3275911, %v1650_v3  ;;  %v448_v24 = vmul.f32 0.5, %v1598_v48 }
 0x10f   : > { %v553_v21 = vmul.f32 1.0614054, %v1620_v14  ;;  %v1630_v34 = vpop.eup %1299  ;;  %1319 = vpow2.f32 %v725_v44  ;;  %vm794_vm5 = vcmp.lt.f32.partialorder %v1602_v52, 0.0  ;;  %vm784_vm6 = vcmp.lt.f32.partialorder %v1605_v55, 0.0 }
 0x110   : > { %v561_v19 = vadd.f32 -1.4531521, %v545_v15  ;;  %v543_v39 = vmul.f32 1.0614054, %v1630_v34  ;;  %v1634_v42 = vpop.eup %1301  ;;  %1321 = vpow2.f32 %v741_v56  ;;  %vm792_vm7 = vcmp.lt.f32.partialorder %v1613_v63, 0.0 }
 0x111   : > { %v569_v36 = vadd.f32 -1.4531521, %v553_v21  ;;  %v551_v53 = vmul.f32 1.0614054, %v1634_v42  ;;  %1323 = vpow2.f32 %v721_v12  ;;  %vm789_vm8 = vcmp.lt.f32.partialorder %v1638_v45, 0.0 }
 0x112   : > { %v577_v38 = vmul.f32 %v1616_v9, %v561_v19  ;;  %v559_v51 = vadd.f32 -1.4531521, %v543_v39  ;;  %v1646_v1 = vpop.eup %1303  ;;  %1325 = vpow2.f32 %v737_v13  ;;  %vm797_vm9 = vcmp.lt.f32.partialorder %v1641_v49, 0.0 }
 0x113   : > { %v585_v43 = vmul.f32 %v1620_v14, %v569_v36  ;;  %v567_v0 = vadd.f32 -1.4531521, %v551_v53  ;;  %v546_v7 = vmul.f32 1.0614054, %v1646_v1  ;;  %v1306_v8 = vpop.eup %1305  ;;  %v509_v36 = vmul.f32 0.3275911, %v1653_v4 }
 0x114   : > { %v593_v50 = vadd.f32 1.4214138, %v577_v38  ;;  %v575_v62 = vmul.f32 %v1630_v34, %v559_v51  ;;  %v1657_v15 = vpop.eup %1307 }
 0x115   : > { %v601_v54 = vadd.f32 1.4214138, %v585_v43  ;;  %v583_v5 = vmul.f32 %v1634_v42, %v567_v0  ;;  %v562_v22 = vadd.f32 -1.4531521, %v546_v7  ;;  %v1661_v27 = vpop.eup %1309  ;;  %v554_v31 = vmul.f32 1.0614054, %v1657_v15 }
 0x116   : > { %v609_v60 = vmul.f32 %v1616_v9, %v593_v50  ;;  %v591_v61 = vadd.f32 1.4214138, %v575_v62  ;;  %v544_v44 = vmul.f32 1.0614054, %v1661_v27 }
 0x117   : > { %v617_v2 = vmul.f32 %v1620_v14, %v601_v54  ;;  %v599_v21 = vadd.f32 1.4214138, %v583_v5  ;;  %v578_v39 = vmul.f32 %v1646_v1, %v562_v22  ;;  %v570_v43 = vadd.f32 -1.4531521, %v554_v31 }
 0x118   : > { %v625_v6 = vadd.f32 -0.28449672, %v609_v60  ;;  %v607_v18 = vmul.f32 %v1630_v34, %v591_v61  ;;  %v1670_v50 = vpop.eup %1311  ;;  %v560_v62 = vadd.f32 -1.4531521, %v544_v44  ;;  %v517_v22 = vadd.f32 1.0, %v501_v32 }
 0x119   : > { %v633_v11 = vadd.f32 -0.28449672, %v617_v2  ;;  %v615_v38 = vmul.f32 %v1634_v42, %v599_v21  ;;  %v594_v56 = vadd.f32 1.4214138, %v578_v39  ;;  %v1314_v58 = vpop.eup %1313  ;;  %v586_v60 = vmul.f32 %v1657_v15, %v570_v43 }
 0x11a   : > { %v641_v17 = vmul.f32 %v1616_v9, %v625_v6  ;;  %v623_v35 = vadd.f32 -0.28449672, %v607_v18  ;;  %v552_v0 = vmul.f32 1.0614054, %v1670_v50  ;;  %v1316_v7 = vpop.eup %1315  ;;  %v576_v12 = vmul.f32 %v1661_v27, %v560_v62 }
 0x11b   : > { %v649_v19 = vmul.f32 %v1620_v14, %v633_v11  ;;  %v631_v54 = vadd.f32 -0.28449672, %v615_v38  ;;  %v610_v5 = vmul.f32 %v1646_v1, %v594_v56  ;;  %v602_v11 = vadd.f32 1.4214138, %v586_v60 }
 0x11c   : > { %v657_v37 = vadd.f32 0.2548296, %v641_v17  ;;  %v639_v53 = vmul.f32 %v1630_v34, %v623_v35  ;;  %v568_v17 = vadd.f32 -1.4531521, %v552_v0  ;;  %v525_v35 = vadd.f32 1.0, %v509_v36 }
 0x11d   : > { %v665_v40 = vadd.f32 0.2548296, %v649_v19  ;;  %v647_v61 = vmul.f32 %v1634_v42, %v631_v54  ;;  %v626_v21 = vadd.f32 -0.28449672, %v610_v5  ;;  %v1318_v19 = vpop.eup %1317  ;;  %v618_v31 = vmul.f32 %v1657_v15, %v602_v11 }
 0x11e   : > { %v673_v51 = vmul.f32 %v1616_v9, %v657_v37  ;;  %v655_v6 = vadd.f32 0.2548296, %v639_v53  ;;  %v584_v37 = vmul.f32 %v1670_v50, %v568_v17  ;;  %v1320_v38 = vpop.eup %1319  ;;  %v1686_v32 = vmul.f32 0.5, %v1565_v20  ;;  %v400_v17 = vpop.f32.mrf.mxu0 }
 0x11f   : > { %v681_v59 = vmul.f32 %v1620_v14, %v665_v40  ;;  %v663_v14 = vadd.f32 0.2548296, %v647_v61  ;;  %v642_v43 = vmul.f32 %v1646_v1, %v626_v21  ;;  %v1322_v54 = vpop.eup %1321  ;;  %1327 = vrcp.f32 %v517_v22 }
 0x120   : > { %v753_v2 = vmul.f32 %v1306_v8, %v673_v51  ;;  %v671_v18 = vmul.f32 %v1630_v34, %v655_v6  ;;  %v592_v8 = vadd.f32 1.4214138, %v576_v12  ;;  %v634_v51 = vadd.f32 -0.28449672, %v618_v31  ;;  %v1324_v6 = vpop.eup %1323 }
 0x121   : > { %v761_v9 = vmul.f32 %v1314_v58, %v681_v59  ;;  %v600_v53 = vadd.f32 1.4214138, %v584_v37  ;;  %v679_v56 = vmul.f32 %v1634_v42, %v663_v14  ;;  %v658_v58 = vadd.f32 0.2548296, %v642_v43 }
 0x122   : > { %v769_v39 = vsub.f32 1.0, %v753_v2  ;;  %v751_v44 = vmul.f32 %v1316_v7, %v671_v18  ;;  %v608_v34 = vmul.f32 %v1661_v27, %v592_v8  ;;  %v650_v36 = vmul.f32 %v1657_v15, %v634_v51 }
 0x123   : > { %v777_v40 = vsub.f32 1.0, %v761_v9  ;;  %1329 = vrcp.f32 %v525_v35  ;;  %v674_v62 = vmul.f32 %v1646_v1, %v658_v58  ;;  %v616_v42 = vmul.f32 %v1670_v50, %v600_v53  ;;  %v432_v53 = vpop.f32.mrf.mxu1 }
 0x124   : > { %v624_v59 = vadd.f32 -0.28449672, %v608_v34  ;;  %v801_v13 = vsub.f32 0.0, %v769_v39  ;;  %v767_v0 = vsub.f32 1.0, %v751_v44  ;;  %v666_v2 = vadd.f32 0.2548296, %v650_v36 }
 0x125   : > { %v809_v60 = vsub.f32 0.0, %v777_v40  ;;  %v1696_v61 = vmul.f32 0.5, %v1573_v25  ;;  %v759_v5 = vmul.f32 %v1318_v19, %v679_v56  ;;  %v754_v7 = vmul.f32 %v1320_v38, %v674_v62 }
 0x126   : > { %v640_v20 = vmul.f32 %v1661_v27, %v624_v59  ;;  %v450_v9 = vmul.f32 0.5, %v1589_v41  ;;  %v682_v11 = vmul.f32 %v1657_v15, %v666_v2  ;;  %v632_v12 = vadd.f32 -0.28449672, %v616_v42 }
 0x127   : > { %v817_v18 = vsel %vm785_vm0, %v801_v13, %v769_v39  ;;  %v770_v14 = vsub.f32 1.0, %v754_v7  ;;  %v458_v25 = vmul.f32 0.5, %v1595_v47  ;;  %v825_v21 = vsel %vm793_vm1, %v809_v60, %v777_v40  ;;  %v1326_v40 = vpop.eup %1325 }
 0x128   : > { %v656_v1 = vadd.f32 0.2548296, %v640_v20  ;;  %v799_v22 = vsub.f32 0.0, %v767_v0  ;;  %v762_v41 = vmul.f32 %v1322_v54, %v682_v11  ;;  %v775_v19 = vsub.f32 1.0, %v759_v5 }
 0x129   : > { %v802_v31 = vsub.f32 0.0, %v770_v14  ;;  %v648_v23 = vmul.f32 %v1670_v50, %v632_v12  ;;  %v1712_v8 = vadd.f32 %v1561_v16, %v400_v17  ;;  %v833_v37 = vadd.f32 1.0, %v817_v18 }
 0x12a   : > { %v672_v15 = vmul.f32 %v1661_v27, %v656_v1  ;;  %v778_v47 = vsub.f32 1.0, %v762_v41  ;;  %v841_v38 = vadd.f32 1.0, %v825_v21  ;;  %v815_v43 = vsel %vm783_vm2, %v799_v22, %v767_v0 }
 0x12b   : > { %v818_v39 = vsel %vm786_vm3, %v802_v31, %v770_v14  ;;  %v664_v27 = vadd.f32 0.2548296, %v648_v23  ;;  %v807_v54 = vsub.f32 0.0, %v775_v19  ;;  %v1725_v46 = vmul.f32 0.70710677, %v1712_v8  ;;  %v1197_v14 = vpop.f32.mrf.mxu0 }
 0x12c   : > { %v752_v35 = vmul.f32 %v1324_v6, %v672_v15  ;;  %v834_v44 = vadd.f32 1.0, %v818_v39  ;;  %v810_v51 = vsub.f32 0.0, %v778_v47  ;;  %v1727_v56 = vpop.eup %1327  ;;  %v849_v58 = vmul.f32 %v833_v37, %v1618_v10  ;;  %v1205_v15 = vpop.f32.mrf.mxu1 }
 0x12d   : > { %v680_v48 = vmul.f32 %v1670_v50, %v664_v27  ;;  %v831_v60 = vadd.f32 1.0, %v815_v43  ;;  %v1735_v55 = vadd.f32 %v1561_v16, %v432_v53  ;;  %v857_v50 = vmul.f32 %v841_v38, %v1686_v32 }
 0x12e   : > { %v768_v34 = vsub.f32 1.0, %v752_v35  ;;  %v850_v29 = vmul.f32 %v834_v44, %v450_v9  ;;  %v826_v36 = vsel %vm794_vm5, %v810_v51, %v778_v47  ;;  %v1739_v42 = vand.u32 2147483647, %v1725_v46  ;;  %v403_v35 = vpop.f32.mrf.mxu0 }
 0x12f   : > { %v842_v62 = vadd.f32 1.0, %v826_v36  ;;  %v760_v0 = vmul.f32 %v1326_v40, %v680_v48  ;;  %v823_v52 = vsel %vm791_vm4, %v807_v54, %v775_v19  ;;  %v549_v7 = vmul.f32 1.0614054, %v1727_v56 }
 0x130   : > { %v800_v59 = vsub.f32 0.0, %v768_v34  ;;  %v1732_v13 = vpop.eup %1329  ;;  %v1119_v2 = vpack.c.bf16 %v850_v29, %v849_v58  ;;  %v499_v9 = vmul.f32 0.3275911, %v1739_v42  ;;  %v847_v11 = vmul.f32 %v831_v60, %v1696_v61 }
 0x131   : > { %v858_v10 = vmul.f32 %v842_v62, %v458_v25  ;;  %v776_v5 = vsub.f32 1.0, %v760_v0  ;;  %v557_v32 = vmul.f32 1.0614054, %v1732_v13  ;;  %v839_v17 = vadd.f32 1.0, %v823_v52  ;;  %v435_v52 = vpop.f32.mrf.mxu1 }
 0x132   : > { %v816_v20 = vsel %vm784_vm6, %v800_v59, %v768_v34  ;;  %1151 = vst [vmem:[%s1743_s8 + $0x8] sm:$0xff] %v1119_v2   ;;  %v515_v18 = vadd.f32 1.0, %v499_v9  ;;  %v455_v25 = vmul.f32 0.5, %v1576_v26  ;;  %v1754_v41 = vmul.f32 0.70710677, %v1735_v55 }
 0x133   : > { %v832_v6 = vadd.f32 1.0, %v816_v20  ;;  %v1139_v1 = vpack.c.bf16 %v858_v10, %v857_v50  ;;  %v808_v30 = vsub.f32 0.0, %v776_v5  ;;  %v456_v61 = vmul.f32 0.5, %v1609_v57 }
 0x134   : > { %v565_v31 = vadd.f32 -1.4531521, %v549_v7  ;;  %1331 = vrcp.f32 %v515_v18  ;;  %v573_v23 = vadd.f32 -1.4531521, %v557_v32  ;;  %v1759_v63 = vand.u32 2147483647, %v1754_v41 }
 0x135   : > { %v848_v12 = vmul.f32 %v832_v6, %v448_v24  ;;  %1155 = vst [vmem:[%s1743_s8 + $0x28] sm:$0xff] %v1139_v1   ;;  %v824_v22 = vsel %vm792_vm7, %v808_v30, %v776_v5  ;;  %v1762_v26 = vadd.f32 %v1197_v14, %v1561_v16  ;;  %v855_v37 = vmul.f32 %v839_v17, %v455_v25 }
 0x136   : > { %v840_v19 = vadd.f32 1.0, %v824_v22  ;;  %v1765_v24 = vadd.f32 %v1205_v15, %v1561_v16  ;;  %v507_v57 = vmul.f32 0.3275911, %v1759_v63  ;;  %v581_v39 = vmul.f32 %v1727_v56, %v565_v31 }
 0x137   : > { %v1114_v21 = vpack.c.bf16 %v848_v12, %v847_v11  ;;  %v1770_v27 = vmul.f32 0.70710677, %v1762_v26  ;;  %v589_v43 = vmul.f32 %v1732_v13, %v573_v23  ;;  %v1777_v51 = vadd.f32 %v1561_v16, %v403_v35 }
 0x138   : > { %v856_v47 = vmul.f32 %v840_v19, %v456_v61  ;;  %v1773_v40 = vmul.f32 0.70710677, %v1765_v24  ;;  %v523_v44 = vadd.f32 1.0, %v507_v57  ;;  %v693_v34 = vsub.f32 0.0, %v1650_v3 }
 0x139   : > { %1115 = vst [vmem:[%s1743_s8] sm:$0xff] %v1114_v21   ;;  %v486_v53 = vand.u32 2147483647, %v1770_v27  ;;  %v701_v48 = vsub.f32 0.0, %v1653_v4  ;;  %v597_v58 = vadd.f32 1.4214138, %v581_v39  ;;  %v691_v7 = vsub.f32 0.0, %v1739_v42 }
 0x13a   : > { %v1134_v38 = vpack.c.bf16 %v856_v47, %v855_v37  ;;  %v494_v54 = vand.u32 2147483647, %v1773_v40  ;;  %1333 = vrcp.f32 %v523_v44  ;;  %v605_v59 = vadd.f32 1.4214138, %v589_v43 }
 0x13b   : > { %v502_v29 = vmul.f32 0.3275911, %v486_v53  ;;  %v1785_v60 = vmul.f32 0.70710677, %v1777_v51  ;;  %v709_v62 = vmul.f32 %v693_v34, %v1650_v3  ;;  %v717_v50 = vmul.f32 %v701_v48, %v1653_v4 }
 0x13c   : > { %1154 = vst [vmem:[%s1743_s8 + $0x20] sm:$0xff] %v1134_v38   ;;  %v510_v36 = vmul.f32 0.3275911, %v494_v54  ;;  %v613_v10 = vmul.f32 %v1727_v56, %v597_v58  ;;  %v621_v5 = vmul.f32 %v1732_v13, %v605_v59  ;;  %v1797_v4 = vadd.f32 %v1561_v16, %v435_v52 }
 0x13d   : > { %v518_v0 = vadd.f32 1.0, %v502_v29  ;;  %v484_v20 = vand.u32 2147483647, %v1785_v60  ;;  %v731_v9 = vmul.f32 1.442695, %v709_v62  ;;  %v707_v14 = vmul.f32 %v691_v7, %v1739_v42 }
 0x13e   : > { %v526_v2 = vadd.f32 1.0, %v510_v36  ;;  %v747_v11 = vmul.f32 1.442695, %v717_v50  ;;  %v629_v12 = vadd.f32 -0.28449672, %v613_v10  ;;  %v694_v25 = vsub.f32 0.0, %v486_v53 }
 0x13f   : > { %1335 = vrcp.f32 %v518_v0  ;;  %v500_v32 = vmul.f32 0.3275911, %v484_v20  ;;  %v1800_v17 = vmul.f32 0.70710677, %v1797_v4  ;;  %v637_v18 = vadd.f32 -0.28449672, %v621_v5 }
 0x140   : > { %1337 = vrcp.f32 %v526_v2  ;;  %v702_v22 = vsub.f32 0.0, %v494_v54  ;;  %v645_v61 = vmul.f32 %v1727_v56, %v629_v12  ;;  %v699_v31 = vsub.f32 0.0, %v1759_v63 }
 0x141   : > { %v1791_v6 = vpop.eup %1331  ;;  %v516_v1 = vadd.f32 1.0, %v500_v32  ;;  %v492_v15 = vand.u32 2147483647, %v1800_v17  ;;  %v653_v37 = vmul.f32 %v1732_v13, %v637_v18  ;;  %v727_v42 = vmul.f32 1.442695, %v707_v14 }
 0x142   : > { %v547_v3 = vmul.f32 1.0614054, %v1791_v6  ;;  %v710_v35 = vmul.f32 %v694_v25, %v486_v53  ;;  %v718_v38 = vmul.f32 %v702_v22, %v494_v54  ;;  %v692_v39 = vsub.f32 0.0, %v484_v20 }
 0x143   : > { %1339 = vrcp.f32 %v516_v1  ;;  %v508_v23 = vmul.f32 0.3275911, %v492_v15  ;;  %v661_v34 = vadd.f32 0.2548296, %v645_v61  ;;  %v715_v58 = vmul.f32 %v699_v31, %v1759_v63 }
 0x144   : > { %v563_v30 = vadd.f32 -1.4531521, %v547_v3  ;;  %1341 = vpow2.f32 %v731_v9  ;;  %v669_v36 = vadd.f32 0.2548296, %v653_v37  ;;  %v733_v62 = vmul.f32 1.442695, %v710_v35 }
 0x145   : > { %1343 = vpow2.f32 %v747_v11  ;;  %v524_v43 = vadd.f32 1.0, %v508_v23  ;;  %v749_v54 = vmul.f32 1.442695, %v718_v38  ;;  %v708_v50 = vmul.f32 %v692_v39, %v484_v20 }
 0x146   : > { %v579_v21 = vmul.f32 %v1791_v6, %v563_v30  ;;  %v677_v63 = vmul.f32 %v1727_v56, %v661_v34  ;;  %v743_v5 = vmul.f32 1.442695, %v715_v58  ;;  %v685_v32 = vmul.f32 %v1732_v13, %v669_v36 }
 0x147   : > { %v1805_v16 = vpop.eup %1333  ;;  %1345 = vrcp.f32 %v524_v43  ;;  %v729_v20 = vmul.f32 1.442695, %v708_v50  ;;  %v700_v12 = vsub.f32 0.0, %v492_v15  ;;  %vm787_vm10 = vcmp.lt.f32.partialorder %v1725_v46, 0.0 }
 0x148   : > { %v595_v19 = vadd.f32 1.4214138, %v579_v21  ;;  %v555_v47 = vmul.f32 1.0614054, %v1805_v16  ;;  %1347 = vpow2.f32 %v727_v42  ;;  %vm790_vm11 = vcmp.lt.f32.partialorder %v1770_v27, 0.0 }
 0x149   : > { %1349 = vpow2.f32 %v733_v62  ;;  %v716_v42 = vmul.f32 %v700_v12, %v492_v15  ;;  %vm798_vm12 = vcmp.lt.f32.partialorder %v1773_v40, 0.0  ;;  %v462_v27 = vmul.f32 0.5, %v1765_v24 }
 0x14a   : > { %v611_v57 = vmul.f32 %v1791_v6, %v595_v19  ;;  %v571_v44 = vadd.f32 -1.4531521, %v555_v47  ;;  %1351 = vpow2.f32 %v749_v54  ;;  %vm788_vm13 = vcmp.lt.f32.partialorder %v1785_v60, 0.0 }
 0x14b   : > { %1353 = vpow2.f32 %v743_v5  ;;  %v745_v62 = vmul.f32 1.442695, %v716_v42  ;;  %v452_v60 = vmul.f32 0.5, %v1777_v51  ;;  %vm795_vm14 = vcmp.lt.f32.partialorder %v1754_v41, 0.0 }
 0x14c   : > { %v627_v48 = vadd.f32 -0.28449672, %v611_v57  ;;  %v1813_v29 = vpop.eup %1335  ;;  %v587_v59 = vmul.f32 %v1805_v16, %v571_v44  ;;  %1355 = vpow2.f32 %v729_v20  ;;  %v453_v20 = vmul.f32 0.5, %v1625_v28 }
 0x14d   : > { %v1816_v0 = vpop.eup %1337  ;;  %v550_v53 = vmul.f32 1.0614054, %v1813_v29  ;;  %1357 = vpow2.f32 %v745_v62  ;;  %vm796_vm15 = vcmp.lt.f32.partialorder %v1800_v17, 0.0  ;;  %v459_v41 = vmul.f32 0.5, %v1735_v55 }
 0x14e   : > { %v643_v2 = vmul.f32 %v1791_v6, %v627_v48  ;;  %v603_v52 = vadd.f32 1.4214138, %v587_v59  ;;  %v558_v10 = vmul.f32 1.0614054, %v1816_v0 }
 0x14f   : > { %v566_v7 = vadd.f32 -1.4531521, %v550_v53 }
 0x150   : > { %v619_v9 = vmul.f32 %v1805_v16, %v603_v52  ;;  %v574_v3 = vadd.f32 -1.4531521, %v558_v10  ;;  %v1824_v11 = vpop.eup %1339  ;;  %v659_v18 = vadd.f32 0.2548296, %v643_v2 }
 0x151   : > { %v582_v1 = vmul.f32 %v1813_v29, %v566_v7  ;;  %v1342_v30 = vpop.eup %1341  ;;  %v548_v25 = vmul.f32 1.0614054, %v1824_v11 }
 0x152   : > { %v635_v14 = vadd.f32 -0.28449672, %v619_v9  ;;  %v590_v56 = vmul.f32 %v1816_v0, %v574_v3  ;;  %v1344_v21 = vpop.eup %1343  ;;  %v757_v22 = vmul.f32 %v1342_v30, %v677_v63  ;;  %v675_v47 = vmul.f32 %v1791_v6, %v659_v18 }
 0x153   : > { %v598_v13 = vadd.f32 1.4214138, %v582_v1  ;;  %v765_v61 = vmul.f32 %v1344_v21, %v685_v32  ;;  %v564_v31 = vadd.f32 -1.4531521, %v548_v25 }
 0x154   : > { %v606_v19 = vadd.f32 1.4214138, %v590_v56  ;;  %v651_v23 = vmul.f32 %v1805_v16, %v635_v14  ;;  %v1834_v39 = vpop.eup %1345  ;;  %v773_v43 = vsub.f32 1.0, %v757_v22  ;;  %v461_v14 = vmul.f32 0.5, %v1628_v33 }
 0x155   : > { %v614_v37 = vmul.f32 %v1813_v29, %v598_v13  ;;  %v580_v57 = vmul.f32 %v1824_v11, %v564_v31  ;;  %v781_v44 = vsub.f32 1.0, %v765_v61  ;;  %v1348_v58 = vpop.eup %1347  ;;  %v556_v15 = vmul.f32 1.0614054, %v1834_v39 }
 0x156   : > { %v622_v35 = vmul.f32 %v1816_v0, %v606_v19  ;;  %v667_v36 = vadd.f32 0.2548296, %v651_v23  ;;  %v755_v6 = vmul.f32 %v1348_v58, %v675_v47  ;;  %v805_v52 = vsub.f32 0.0, %v773_v43  ;;  %v1350_v7 = vpop.eup %1349 }
 0x157   : > { %v630_v38 = vadd.f32 -0.28449672, %v614_v37  ;;  %v596_v48 = vadd.f32 1.4214138, %v580_v57  ;;  %v572_v2 = vadd.f32 -1.4531521, %v556_v15  ;;  %v1352_v1 = vpop.eup %1351 }
 0x158   : > { %v638_v34 = vadd.f32 -0.28449672, %v622_v35  ;;  %v813_v10 = vsub.f32 0.0, %v781_v44  ;;  %v683_v32 = vmul.f32 %v1805_v16, %v667_v36  ;;  %v771_v12 = vsub.f32 1.0, %v755_v6  ;;  %v1354_v16 = vpop.eup %1353 }
 0x159   : > { %v646_v59 = vmul.f32 %v1813_v29, %v630_v38  ;;  %v612_v54 = vmul.f32 %v1824_v11, %v596_v48  ;;  %v588_v3 = vmul.f32 %v1834_v39, %v572_v2  ;;  %v821_v21 = vsel %vm789_vm8, %v805_v52, %v773_v43  ;;  %v1356_v33 = vpop.eup %1355 }
 0x15a   : > { %v654_v53 = vmul.f32 %v1816_v0, %v638_v34  ;;  %v829_v22 = vsel %vm797_vm9, %v813_v10, %v781_v44  ;;  %v763_v61 = vmul.f32 %v1354_v16, %v683_v32  ;;  %v454_v23 = vmul.f32 0.5, %v1762_v26 }
 0x15b   : > { %v662_v50 = vadd.f32 0.2548296, %v646_v59  ;;  %v628_v5 = vadd.f32 -0.28449672, %v612_v54  ;;  %v604_v25 = vadd.f32 1.4214138, %v588_v3 }
 0x15c   : > { %v670_v63 = vadd.f32 0.2548296, %v654_v53  ;;  %v837_v42 = vadd.f32 1.0, %v821_v21  ;;  %v845_v47 = vadd.f32 1.0, %v829_v22  ;;  %v779_v38 = vsub.f32 1.0, %v763_v61 }
 0x15d   : > { %v678_v9 = vmul.f32 %v1813_v29, %v662_v50  ;;  %v644_v18 = vmul.f32 %v1824_v11, %v628_v5  ;;  %v620_v19 = vmul.f32 %v1834_v39, %v604_v25  ;;  %v1358_v50 = vpop.eup %1357  ;;  %v451_v2 = vmul.f32 0.5, %v1712_v8 }
 0x15e   : > { %v686_v30 = vmul.f32 %v1816_v0, %v670_v63  ;;  %v803_v0 = vsub.f32 0.0, %v771_v12  ;;  %v853_v59 = vmul.f32 %v837_v42, %v453_v20  ;;  %v861_v15 = vmul.f32 %v845_v47, %v461_v14 }
 0x15f   : > { %v758_v56 = vmul.f32 %v1350_v7, %v678_v9  ;;  %v660_v13 = vadd.f32 0.2548296, %v644_v18  ;;  %v636_v49 = vadd.f32 -0.28449672, %v620_v19  ;;  %v811_v53 = vsub.f32 0.0, %v779_v38 }
 0x160   : > { %v766_v29 = vmul.f32 %v1352_v1, %v686_v30  ;;  %v460_v20 = vmul.f32 0.5, %v1797_v4 }
 0x161   : > { %v774_v28 = vsub.f32 1.0, %v758_v56  ;;  %v676_v45 = vmul.f32 %v1824_v11, %v660_v13  ;;  %v652_v44 = vmul.f32 %v1834_v39, %v636_v49  ;;  %v819_v11 = vsel %vm787_vm10, %v803_v0, %v771_v12 }
 0x162   : > { %v782_v31 = vsub.f32 1.0, %v766_v29  ;;  %v835_v40 = vadd.f32 1.0, %v819_v11  ;;  %v827_v32 = vsel %vm795_vm14, %v811_v53, %v779_v38 }
 0x163   : > { %v806_v37 = vsub.f32 0.0, %v774_v28  ;;  %v756_v57 = vmul.f32 %v1356_v33, %v676_v45  ;;  %v668_v36 = vadd.f32 0.2548296, %v652_v44  ;;  %v843_v1 = vadd.f32 1.0, %v827_v32 }
 0x164   : > { %v814_v35 = vsub.f32 0.0, %v782_v31  ;;  %v851_v7 = vmul.f32 %v835_v40, %v451_v2 }
 0x165   : > { %v822_v43 = vsel %vm790_vm11, %v806_v37, %v774_v28  ;;  %v772_v26 = vsub.f32 1.0, %v756_v57  ;;  %v684_v46 = vmul.f32 %v1834_v39, %v668_v36  ;;  %v859_v30 = vmul.f32 %v843_v1, %v459_v41 }
 0x166   : > { %v838_v34 = vadd.f32 1.0, %v822_v43  ;;  %v830_v48 = vsel %vm798_vm12, %v814_v35, %v782_v31 }
 0x167   : > { %v846_v58 = vadd.f32 1.0, %v830_v48  ;;  %v804_v6 = vsub.f32 0.0, %v772_v26  ;;  %v764_v5 = vmul.f32 %v1358_v50, %v684_v46 }
 0x168   : > { %v854_v62 = vmul.f32 %v838_v34, %v454_v23 }
 0x169   : > { %v862_v54 = vmul.f32 %v846_v58, %v462_v27  ;;  %v820_v24 = vsel %vm788_vm13, %v804_v6, %v772_v26  ;;  %v780_v9 = vsub.f32 1.0, %v764_v5 }
 0x16a   : > { %v1129_v52 = vpack.c.bf16 %v854_v62, %v853_v59  ;;  %v836_v63 = vadd.f32 1.0, %v820_v24 }
 0x16b   : > { %v1149_v10 = vpack.c.bf16 %v862_v54, %v861_v15  ;;  %v812_v8 = vsub.f32 0.0, %v780_v9 }
 0x16c   : > { %1153 = vst [vmem:[%s1743_s8 + $0x18] sm:$0xff] %v1129_v52   ;;  %v852_v39 = vmul.f32 %v836_v63, %v452_v60 }
 0x16d   : > { %1157 = vst [vmem:[%s1743_s8 + $0x38] sm:$0xff] %v1149_v10   ;;  %v828_v51 = vsel %vm796_vm15, %v812_v8, %v780_v9 }
 0x16e   : > { %v1124_v3 = vpack.c.bf16 %v852_v39, %v851_v7  ;;  %v844_v12 = vadd.f32 1.0, %v828_v51 }
 0x170   : > { %1152 = vst [vmem:[%s1743_s8 + $0x10] sm:$0xff] %v1124_v3   ;;  %v860_v18 = vmul.f32 %v844_v12, %v460_v20 }
 0x172   : > { %v1144_v17 = vpack.c.bf16 %v860_v18, %v859_v30 }
 0x174   : > { %1156 = vst [vmem:[%s1743_s8 + $0x30] sm:$0xff] %v1144_v17  }
 0x175   : > { %1372 = shalt.err (!%p1369_p5)
}
 0x176   : > { %s1373_s28 = scalar_lea.hbm %s1875_s19, 1024  ;;  %s1377_s5 = scalar_lea.hbm %s1930_s3, 2048 }
 0x177   : > { %p1374_p6 = scmp.ne.s32.totalorder %s1875_s19, %s1373_s28  ;;  %p1378_p10 = scmp.lt.s32.totalorder %s1875_s19, %s1930_s3 }
 0x178   : > { %p1379_p11 = scmp.lt.s32.totalorder %s1377_s5, %s1373_s28 }
 0x179   : > { %p1375_p7 = pnand %p1374_p6, %p1500_p4 }
 0x17a   : > { %p1380_p12 = por %p1379_p11, %p1378_p10 }
 0x17b   : > { %p1376_p9 = pneg %p1375_p7 }
 0x17d   : > { %p1381_p13 = pnand %p1380_p12, %p1376_p9 }
 0x17f   : > { %1384 = shalt.err (!%p1381_p13)
}
 0x180   : > { %s1438_s7 = smov 64   ;;  %s1439_s8 = smov 4  }
 0x181   : > { %1222 = dma.vmem_to_hbm [thread:$0]  (%p1500_p4), %s1877_s10, 1024, %s1875_s19, %s1882_s21, %s1438_s7, %s1438_s7, %s1439_s8  }
 0x182 PF: > { %p1228_p0 = scmp.ge.s32.totalorder %s1435_s17, 2  ;;  %s974_s9 = sand.u32 1, %s1415_s12  }
 0x183   : > { %s975_s11 = scalar_lea.sflag [#allocation3], %s974_s9 }
 0x184   : > { %p1225_p1 = pnand %p1228_p0, %p1507_p8 }
 0x186   : > { %p1226_p2 = pneg %p1225_p1 }
 0x188   : > { %1410 = dma.done.wait (%p1226_p2), %s975_s11, 1024  }
 0x189   : > { %1412 = vsyncadd (%p1226_p2), %s975_s11, 4294966272  ;;  %s16_s17 = sadd.s32 1, %s1435_s17   ;;  %s1933_s12 = smov %s1419_s13 }
 0x18a   : > { %p13_p3 = scmp.ge.s32.totalorder %s16_s17, 4   ;;  %s1934_s13 = smov %s1423_s14 }
 0x18b   : > { %s1935_s14 = smov %s1513_s25  ;;  %s1936_s15 = smov %s1431_s16 }
 0x18c   : > { %s1937_s16 = smov %s1939_s20  ;;  %15 = sbr.rel (!%p13_p3) target bundleno = 4 (0x4), region = 70 }
 0x191   :  { %980 = vsyncpa [#allocation3], 1 }
 0x192   :  { %982 = vsyncpa [#allocation3 + $0x1], 1 }

</bundles_post_ra>
